<compile_context>
chip_gen: v7x
topology: tpu7x:2x2x1
jax: 0.10.0
libtpu: 0.0.40
codegen_flags: <defaults>
</compile_context>

<pallas_src>
import functools

import jax
import jax.numpy as jnp
from jax import lax
from jax.experimental import pallas as pl
from jax.experimental.pallas import tpu as pltpu


def _round_up(n, m):
    return ((n + m - 1) // m) * m


def _center_loss_kernel(x_ref,     # VMEM (TB, D)   features tile
                        lab_ref,   # VMEM (TB, 1)   int32 labels tile
                        c_ref,     # VMEM (C, D)    centers (resident)
                        out_ref,   # VMEM (1, 1, 1) f32 per-tile partial sum
                        *, block_b, batch):
    i = pl.program_id(0)
    num_classes = c_ref.shape[0]

    # ---- vectorized gather: csel[r, :] = centers[labels[r], :] -------------
    # One-hot built on the VPU, gather done as a (TB, C) @ (C, D) MXU matmul.
    lab = lab_ref[...]                                               # (TB, 1)
    cls = lax.broadcasted_iota(jnp.int32, (block_b, num_classes), 1)
    onehot = (lab == cls).astype(c_ref.dtype)                        # (TB, C)
    csel = jnp.dot(onehot, c_ref[...],
                   preferred_element_type=jnp.float32)               # (TB, D) f32

    # ---- per-row squared distance + clamp + tile reduction ------------------
    x = x_ref[...].astype(jnp.float32)                               # (TB, D)
    diff = x - csel
    d = jnp.sum(diff * diff, axis=1, keepdims=True)                  # (TB, 1)
    # torch clamp(min=1e-12, max=1e12) on the selected (label) column.
    d = jnp.clip(d, 1e-12, 1.0e12)

    # Zero out padded rows (global row index >= real batch size).
    rows = i * block_b + lax.broadcasted_iota(jnp.int32, (block_b, 1), 0)
    d = jnp.where(rows < batch, d, 0.0)

    out_ref[...] = jnp.sum(d).reshape(1, 1, 1)


def _choose_block_b(b, d, itemsize):
    # Target ~2 MiB per x tile (lane dim padded to >=128), 8..512 rows.
    row_bytes = max(d, 128) * max(itemsize, 1)
    block_b = max(8, min(512, (2 * 1024 * 1024) // row_bytes))
    block_b = max(8, (block_b // 8) * 8)
    return min(block_b, _round_up(b, 8))


def center_loss(x, centers, labels, *, block_b=None):
    """x: (B, D), centers: (C, D), labels: (B,) int -> scalar f32 loss.

    Matches the PyTorch CenterLoss.forward (including the clamp of the
    masked-out zeros to 1e-12, re-added as a closed-form constant).
    """
    b, d = x.shape
    c, d2 = centers.shape
    assert d == d2, "feature dim mismatch"
    # TODO(synk): for feat_dim < 128 (demo uses D=2) the lane dim is mostly
    # padding; a (D, B)-transposed layout would be lane-dense if it mattered.

    if block_b is None:
        block_b = _choose_block_b(b, d, x.dtype.itemsize)
    block_b = max(8, (block_b // 8) * 8)
    b_pad = _round_up(b, block_b)
    nb = b_pad // block_b

    # v7x megacore: prefer >= 2 tiles on the "parallel" B axis when the batch
    # is big enough to split, so both TensorCores get work.
    if nb == 1 and b > 8 and block_b > 8:
        block_b = max(8, _round_up((block_b + 1) // 2, 8))
        b_pad = _round_up(b, block_b)
        nb = b_pad // block_b

    labels = labels.astype(jnp.int32)
    if b_pad != b:
        x = jnp.pad(x, ((0, b_pad - b), (0, 0)))
        labels = jnp.pad(labels, (0, b_pad - b))  # pad label 0: valid idx, masked out
    labels2d = labels.reshape(b_pad, 1)

    kernel = functools.partial(_center_loss_kernel, block_b=block_b, batch=b)

    # Explicit VMEM budget: double-buffered x + labels tiles, resident centers,
    # headroom for f32 intermediates.
    lane = 128
    vmem_bytes = (
        2 * block_b * max(d, lane) * x.dtype.itemsize
        + 2 * block_b * lane * 4
        + 2 * _round_up(c, 8) * max(d, lane) * centers.dtype.itemsize
        + 4 * block_b * max(d, lane) * 4
        + (2 << 20)
    )
    vmem_limit = int(min(64 * 1024 * 1024, max(16 * 1024 * 1024, vmem_bytes)))

    def _call(single_buffer_centers):
        if single_buffer_centers:
            # Constant index_map -> DMA'd once; no double buffer needed.
            centers_spec = pl.BlockSpec((c, d), lambda i: (0, 0),
                                        pipeline_mode=pl.Buffered(1))
        else:
            centers_spec = pl.BlockSpec((c, d), lambda i: (0, 0))
        return pl.pallas_call(
            kernel,
            out_shape=jax.ShapeDtypeStruct((nb, 1, 1), jnp.float32),
            grid_spec=pltpu.PrefetchScalarGridSpec(
                num_scalar_prefetch=0,
                grid=(nb,),
                in_specs=[
                    pl.BlockSpec((block_b, d), lambda i: (i, 0)),   # x tile
                    pl.BlockSpec((block_b, 1), lambda i: (i, 0)),   # labels tile
                    centers_spec,                                   # resident centers
                ],
                out_specs=pl.BlockSpec((1, 1, 1), lambda i: (i, 0, 0)),
            ),
            compiler_params=pltpu.CompilerParams(
                dimension_semantics=("parallel",),   # B tiles across TCs on v7x
                vmem_limit_bytes=vmem_limit,
            ),
        )(x, labels2d, centers)

    try:
        partials = jax.block_until_ready(_call(True))
    except Exception:
        # Fallback if this JAX build rejects single-buffered pipeline_mode.
        partials = _call(False)

    # PyTorch sums clamp(distmat * mask): each row also contributes (C-1)
    # masked zeros clamped to 1e-12. Add that exact constant back.
    loss = jnp.sum(partials) / jnp.float32(b) + jnp.float32(c - 1) * jnp.float32(1e-12)
    return loss


def center_loss_ref(x, centers, labels):
    """Pure-JAX reference mirroring the PyTorch forward exactly."""
    b = x.shape[0]
    c = centers.shape[0]
    distmat = (
        jnp.sum(x * x, axis=1, keepdims=True)
        + jnp.sum(centers * centers, axis=1, keepdims=True).T
        - 2.0 * x @ centers.T
    )
    mask = (labels[:, None] == jnp.arange(c)[None, :]).astype(jnp.float32)
    dist = jnp.clip(distmat * mask, 1e-12, 1.0e12)
    return jnp.sum(dist) / b


if __name__ == "__main__":
    num_classes = 10
    feat_dim = 2
    batch = 8

    key = jax.random.PRNGKey(0)
    k_centers, k_x, k_lab = jax.random.split(key, 3)

    # Deterministic "parameter" init (nn.Parameter(torch.randn(C, D)) analogue).
    centers = jax.random.normal(k_centers, (num_classes, feat_dim), dtype=jnp.float32)
    x = jax.random.normal(k_x, (batch, feat_dim), dtype=jnp.float32)
    labels = jax.random.randint(k_lab, (batch,), 0, num_classes, dtype=jnp.int32)

    loss = center_loss(x, centers, labels)
    jax.block_until_ready(loss)

    ref = center_loss_ref(x, centers, labels)
    assert jnp.allclose(loss, ref, rtol=1e-5, atol=1e-5), (loss, ref)

    print("KERNEL_OK")
</pallas_src>

<mosaic_0001>
module attributes {stable_mosaic.version = 11 : i64} {
  func.func @_center_loss_kernel(%arg0: i32, %arg1: memref<8x2xf32, #tpu.memory_space<vmem>>, %arg2: memref<8x1xi32, #tpu.memory_space<vmem>>, %arg3: memref<10x2xf32, #tpu.memory_space<vmem>>, %arg4: memref<1x1x1xf32, #tpu.memory_space<vmem>>) attributes {dimension_semantics = [#tpu.dimension_semantics<parallel>], iteration_bounds = array<i64: 1>, scalar_prefetch = 0 : i64, scratch_operands = 0 : i64, tpu.core_type = #tpu.core_type<tc>, window_params = [{transform_indices = @transform_0, window_bounds = array<i64: 8, 2>}, {transform_indices = @transform_1, window_bounds = array<i64: 8, 1>}, {pipeline_mode = #tpu.pipeline_mode<synchronous>, transform_indices = @transform_2, window_bounds = array<i64: 10, 2>}, {transform_indices = @transform_3, window_bounds = array<i64: 1, 1, 1>}]} {
    %c0 = arith.constant 0 : index
    %c0_0 = arith.constant 0 : index
    %0 = vector.load %arg2[%c0, %c0_0] : memref<8x1xi32, #tpu.memory_space<vmem>>, vector<8x1xi32>
    %1 = tpu.iota {dimensions = array<i32: 1>} : vector<8x10xi32>
    %2 = vector.broadcast %0 : vector<8x1xi32> to vector<8x10xi32>
    %3 = arith.cmpi eq, %2, %1 : vector<8x10xi32>
    %4 = arith.extui %3 : vector<8x10xi1> to vector<8x10xi32>
    %5 = arith.sitofp %4 : vector<8x10xi32> to vector<8x10xf32>
    %c0_1 = arith.constant 0 : index
    %c0_2 = arith.constant 0 : index
    %6 = vector.load %arg3[%c0_1, %c0_2] : memref<10x2xf32, #tpu.memory_space<vmem>>, vector<10x2xf32>
    %cst = arith.constant dense<0.000000e+00> : vector<8x2xf32>
    %7 = tpu.matmul %5, %6, %cst {dimension_numbers = #tpu.dot_dimension_numbers<[1], [0], [0], [1], [0, 0, 1, 1], [], []>} : vector<8x10xf32>, vector<10x2xf32>, vector<8x2xf32> -> vector<8x2xf32>
    %c0_3 = arith.constant 0 : index
    %c0_4 = arith.constant 0 : index
    %8 = vector.load %arg1[%c0_3, %c0_4] : memref<8x2xf32, #tpu.memory_space<vmem>>, vector<8x2xf32>
    %9 = arith.subf %8, %7 : vector<8x2xf32>
    %10 = arith.mulf %9, %9 : vector<8x2xf32>
    %cst_5 = arith.constant dense<0.000000e+00> : vector<8xf32>
    %11 = vector.multi_reduction <add>, %10, %cst_5 [1] : vector<8x2xf32> to vector<8xf32>
    %12 = vector.shape_cast %11 : vector<8xf32> to vector<8x1xf32>
    %cst_6 = arith.constant 9.99999996E-13 : f32
    %cst_7 = arith.constant 9.99999995E+11 : f32
    %13 = vector.broadcast %cst_6 : f32 to vector<8x1xf32>
    %14 = arith.maximumf %13, %12 : vector<8x1xf32>
    %15 = vector.broadcast %cst_7 : f32 to vector<8x1xf32>
    %16 = arith.minimumf %15, %14 : vector<8x1xf32>
    %c8_i32 = arith.constant 8 : i32
    %17 = arith.muli %arg0, %c8_i32 : i32
    %18 = tpu.iota {dimensions = array<i32: 0>} : vector<8x1xi32>
    %19 = vector.broadcast %17 : i32 to vector<8x1xi32>
    %20 = arith.addi %19, %18 : vector<8x1xi32>
    %c8_i32_8 = arith.constant 8 : i32
    %21 = vector.broadcast %c8_i32_8 : i32 to vector<8x1xi32>
    %22 = arith.cmpi slt, %20, %21 : vector<8x1xi32>
    %cst_9 = arith.constant 0.000000e+00 : f32
    %23 = vector.broadcast %cst_9 : f32 to vector<8x1xf32>
    %24 = arith.select %22, %16, %23 : vector<8x1xi1>, vector<8x1xf32>
    %25 = vector.shape_cast %24 : vector<8x1xf32> to vector<1x8x1xf32>
    %cst_10 = arith.constant dense<0.000000e+00> : vector<1xf32>
    %26 = vector.multi_reduction <add>, %25, %cst_10 [1, 2] : vector<1x8x1xf32> to vector<1xf32>
    %27 = vector.shape_cast %26 : vector<1xf32> to vector<1x1x1xf32>
    %28 = vector.extract %27[0, 0, 0] : f32 from vector<1x1x1xf32>
    %29 = vector.broadcast %28 : f32 to vector<1x1x1xf32>
    %c0_11 = arith.constant 0 : index
    %c0_12 = arith.constant 0 : index
    %c0_13 = arith.constant 0 : index
    %30 = vector.load %arg4[%c0_11, %c0_12, %c0_13] : memref<1x1x1xf32, #tpu.memory_space<vmem>>, vector<1x1x1xf32>
    tpu.vector_store %arg4[%c0_11, %c0_12, %c0_13], %29 {strides = array<i32>} : memref<1x1x1xf32, #tpu.memory_space<vmem>>, vector<1x1x1xf32>,
    return
  }
  func.func @transform_0(%arg0: i32) -> (i32, i32) {
    %c0_i32 = arith.constant 0 : i32
    %c0_i32_0 = arith.constant 0 : i32
    return %arg0, %c0_i32 : i32, i32
  }
  func.func @transform_1(%arg0: i32) -> (i32, i32) {
    %c0_i32 = arith.constant 0 : i32
    %c0_i32_0 = arith.constant 0 : i32
    return %arg0, %c0_i32 : i32, i32
  }
  func.func @transform_2(%arg0: i32) -> (i32, i32) {
    %c0_i32 = arith.constant 0 : i32
    %c0_i32_0 = arith.constant 0 : i32
    %c0_i32_1 = arith.constant 0 : i32
    return %c0_i32, %c0_i32_0 : i32, i32
  }
  func.func @transform_3(%arg0: i32) -> (i32, i32, i32) {
    %c0_i32 = arith.constant 0 : i32
    %c0_i32_0 = arith.constant 0 : i32
    %c0_i32_1 = arith.constant 0 : i32
    return %arg0, %c0_i32, %c0_i32_0 : i32, i32, i32
  }
}

module attributes {stable_mosaic.version = 11 : i64} {
  func.func @_center_loss_kernel(%arg0: i32, %arg1: memref<8x2xf32, #tpu.memory_space<vmem>>, %arg2: memref<8x1xi32, #tpu.memory_space<vmem>>, %arg3: memref<10x2xf32, #tpu.memory_space<vmem>>, %arg4: memref<1x1x1xf32, #tpu.memory_space<vmem>>) attributes {dimension_semantics = [#tpu.dimension_semantics<parallel>], iteration_bounds = array<i64: 1>, scalar_prefetch = 0 : i64, scratch_operands = 0 : i64, tpu.core_type = #tpu.core_type<tc>, window_params = [{transform_indices = @transform_0, window_bounds = array<i64: 8, 2>}, {transform_indices = @transform_1, window_bounds = array<i64: 8, 1>}, {pipeline_mode = #tpu.pipeline_mode<synchronous>, transform_indices = @transform_2, window_bounds = array<i64: 10, 2>}, {transform_indices = @transform_3, window_bounds = array<i64: 1, 1, 1>}]} {
    %c0 = arith.constant 0 : index
    %c0_0 = arith.constant 0 : index
    %0 = vector.load %arg2[%c0, %c0_0] : memref<8x1xi32, #tpu.memory_space<vmem>>, vector<8x1xi32>
    %1 = tpu.iota {dimensions = array<i32: 1>} : vector<8x10xi32>
    %2 = vector.broadcast %0 : vector<8x1xi32> to vector<8x10xi32>
    %3 = arith.cmpi eq, %2, %1 : vector<8x10xi32>
    %4 = arith.extui %3 : vector<8x10xi1> to vector<8x10xi32>
    %5 = arith.sitofp %4 : vector<8x10xi32> to vector<8x10xf32>
    %c0_1 = arith.constant 0 : index
    %c0_2 = arith.constant 0 : index
    %6 = vector.load %arg3[%c0_1, %c0_2] : memref<10x2xf32, #tpu.memory_space<vmem>>, vector<10x2xf32>
    %cst = arith.constant dense<0.000000e+00> : vector<8x2xf32>
    %7 = tpu.matmul %5, %6, %cst {dimension_numbers = #tpu.dot_dimension_numbers<[1], [0], [0], [1], [0, 0, 1, 1], [], []>} : vector<8x10xf32>, vector<10x2xf32>, vector<8x2xf32> -> vector<8x2xf32>
    %c0_3 = arith.constant 0 : index
    %c0_4 = arith.constant 0 : index
    %8 = vector.load %arg1[%c0_3, %c0_4] : memref<8x2xf32, #tpu.memory_space<vmem>>, vector<8x2xf32>
    %9 = arith.subf %8, %7 : vector<8x2xf32>
    %10 = arith.mulf %9, %9 : vector<8x2xf32>
    %cst_5 = arith.constant dense<0.000000e+00> : vector<8xf32>
    %11 = vector.multi_reduction <add>, %10, %cst_5 [1] : vector<8x2xf32> to vector<8xf32>
    %12 = vector.shape_cast %11 : vector<8xf32> to vector<8x1xf32>
    %cst_6 = arith.constant 9.99999996E-13 : f32
    %cst_7 = arith.constant 9.99999995E+11 : f32
    %13 = vector.broadcast %cst_6 : f32 to vector<8x1xf32>
    %14 = arith.maximumf %13, %12 : vector<8x1xf32>
    %15 = vector.broadcast %cst_7 : f32 to vector<8x1xf32>
    %16 = arith.minimumf %15, %14 : vector<8x1xf32>
    %c8_i32 = arith.constant 8 : i32
    %17 = arith.muli %arg0, %c8_i32 : i32
    %18 = tpu.iota {dimensions = array<i32: 0>} : vector<8x1xi32>
    %19 = vector.broadcast %17 : i32 to vector<8x1xi32>
    %20 = arith.addi %19, %18 : vector<8x1xi32>
    %c8_i32_8 = arith.constant 8 : i32
    %21 = vector.broadcast %c8_i32_8 : i32 to vector<8x1xi32>
    %22 = arith.cmpi slt, %20, %21 : vector<8x1xi32>
    %cst_9 = arith.constant 0.000000e+00 : f32
    %23 = vector.broadcast %cst_9 : f32 to vector<8x1xf32>
    %24 = arith.select %22, %16, %23 : vector<8x1xi1>, vector<8x1xf32>
    %25 = vector.shape_cast %24 : vector<8x1xf32> to vector<1x8x1xf32>
    %cst_10 = arith.constant dense<0.000000e+00> : vector<1xf32>
    %26 = vector.multi_reduction <add>, %25, %cst_10 [1, 2] : vector<1x8x1xf32> to vector<1xf32>
    %27 = vector.shape_cast %26 : vector<1xf32> to vector<1x1x1xf32>
    %28 = vector.extract %27[0, 0, 0] : f32 from vector<1x1x1xf32>
    %29 = vector.broadcast %28 : f32 to vector<1x1x1xf32>
    %c0_11 = arith.constant 0 : index
    %c0_12 = arith.constant 0 : index
    %c0_13 = arith.constant 0 : index
    %30 = vector.load %arg4[%c0_11, %c0_12, %c0_13] : memref<1x1x1xf32, #tpu.memory_space<vmem>>, vector<1x1x1xf32>
    tpu.vector_store %arg4[%c0_11, %c0_12, %c0_13], %29 {strides = array<i32>} : memref<1x1x1xf32, #tpu.memory_space<vmem>>, vector<1x1x1xf32>,
    return
  }
  func.func @transform_0(%arg0: i32) -> (i32, i32) {
    %c0_i32 = arith.constant 0 : i32
    %c0_i32_0 = arith.constant 0 : i32
    return %arg0, %c0_i32 : i32, i32
  }
  func.func @transform_1(%arg0: i32) -> (i32, i32) {
    %c0_i32 = arith.constant 0 : i32
    %c0_i32_0 = arith.constant 0 : i32
    return %arg0, %c0_i32 : i32, i32
  }
  func.func @transform_2(%arg0: i32) -> (i32, i32) {
    %c0_i32 = arith.constant 0 : i32
    %c0_i32_0 = arith.constant 0 : i32
    %c0_i32_1 = arith.constant 0 : i32
    return %c0_i32, %c0_i32_0 : i32, i32
  }
  func.func @transform_3(%arg0: i32) -> (i32, i32, i32) {
    %c0_i32 = arith.constant 0 : i32
    %c0_i32_0 = arith.constant 0 : i32
    %c0_i32_1 = arith.constant 0 : i32
    return %arg0, %c0_i32, %c0_i32_0 : i32, i32, i32
  }
}

</mosaic_0001>

<bundles_post_ra>
// kernel: tpu_custom_call.1
= control target key start
LH: loop header
LB: loop body
LE: loop exit
PB: predicated region body
PF: predicated region fallthrough
CT: control target
= control target key end

     0   :  { %v198_v3 = vmov 0   ;;  %v199_v4 = vmov 0.0|0.0   ;;  %vm30_vm0 = vcmask 1041408   ;;  %s248_s0 = inlined_call_operand.vmem [shape: f32[8,2], index: 0, kind: input, shape index: {}]   ;;  %s249_s1 = inlined_call_operand.vmem [shape: s32[8,1], index: 1, kind: input, shape index: {}]   ;;  %s250_s2 = inlined_call_operand.vmem [shape: f32[10,2], index: 2, kind: input, shape index: {}]   ;;  %s251_s3 = inlined_call_operand.hbm [shape: f32[1,1,1], index: 3, kind: output, shape index: {}]  }
   0x1   :  { %v15_v0 = vld [vmem:[%s249_s1] sm:$0xff]  ;;  %v25_v2 = vld [vmem:[%s250_s2 + $0x8] sm:$0x3]  ;;  %173 = vset.pattern.permute.xlu0 %v198_v3  ;;  %161 = vmatprep.subr.bf16.mxu0 %v199_v4 }
   0x2   :  { %v24_v1 = vld [vmem:[%s250_s2] sm:$0xff] }
   0x3   :  { %v162_v5 = vpack.c.bf16 %v25_v2, %v24_v1 }
   0x4   :  { %8 = vsyncpa [#allocation3], 0  ;;  %19 = vperm.xlu0 %173, %v15_v0   ;;  %vm200_vm1 = vmmov 1   ;;  %vm201_vm3 = vmmov 0   ;;  %v202_v6 = vmov 0.0   ;;  %v16_v7 = vlaneseq  ;;  %v104_v11 = vld [vmem:[%s248_s0] sm:$0xff] }
   0x5   :  { %vm163_vm2 = vmpackc.low %vm30_vm0, %vm200_vm1  ;;  %158 = vmatprep.mubr.msk.f32.mxu0 %vm201_vm3, %v202_v6  ;;  %vm26_vm4 = vcmask 80896   ;;  %vm107_vm6 = vcmask 15360   ;;  %vm120_vm7 = vcmask 7168   ;;  %s203_s0 = smov [#allocation2]   ;;  %vm132_vm8 = vcmask 0  }
   0x6   :  { %164 = vmatpush3.bf16.msk.msra.mxu0 %vm163_vm2, %v162_v5  ;;  %v17_v8 = vand.u32 127, %v16_v7  ;;  %s140_s18 = sshll.u32 %s203_s0, 4  ;;  %s141_s18 = int_to_ptr.vmem [resolvable:$true] %s140_s18 }
   0x7   :  { %s174_s20 = scalar_lea.vmem %s141_s18, 16  ;;  %s178_s21 = scalar_lea.vmem %s141_s18, 32 }
   0x8   :  { %p175_p0 = scmp.ne.s32.totalorder %s141_s18, %s174_s20  ;;  %p179_p1 = scmp.lt.s32.totalorder %s141_s18, %s141_s18 }
   0x9   :  { %p180_p2 = scmp.lt.s32.totalorder %s178_s21, %s174_s20 }
   0xb   :  { %p181_p3 = por %p180_p2, %p179_p1 }
   0xd   :  { %p182_p4 = pnand %p181_p3, %p175_p0 }
  0x83   :  { %v20_v9 = vpop.permute.xlu0 %19 }
  0x84   :  { %vm21_vm5 = vcmp.eq.s32.totalorder %v20_v9, %v17_v8 }
  0x85   :  { %v148_v10 = vsel %vm21_vm5, 1.0, %v202_v6 }
  0x86   :  { %159 = vmatmul.mubr.msk.f32.vlgmr.msra.gmra.mrb[0].mxu0 %vm26_vm4, %v148_v10 }
 0x159   :  { %v100_v12 = vpop.f32.mrb[0].mxu0 }
 0x15a   :  { %v105_v13 = vsub.f32 %v104_v11, %v100_v12  ;;  %v160_v14 = vpop.f32.mrb[1].mxu0 }
 0x15c   :  { %v106_v15 = vmul.f32 %v105_v13, %v105_v13 }
 0x15e   :  { %v108_v16 = vsel %vm107_vm6, %v106_v15, 0.0 }
 0x15f   :  { %109 = vadd.xlane.f32.xlu0 %v108_v16 }
 0x1ec   :  { %v110_v17 = vpop.xlane.xlu0 %109 }
 0x1ed   :  { %v111_v18 = vmax.f32 %v110_v17, 1e-12 }
 0x1ef   :  { %v112_v19 = vmin.f32 %v111_v18, 1e+12 }
 0x1f1   :  { %v121_v20 = vsel %vm120_vm7, %v112_v19, 0.0 }
 0x1f2   :  { %122 = vadd.xlane.f32.xlu1 %v121_v20 }
 0x27f   :  { %v123_v21 = vpop.xlane.xlu1 %122 }
 0x280   :  { %v124_v22 = vrot.slane %v123_v21, 4 }
 0x282   :  { %v125_v23 = vadd.f32 %v124_v22, %v123_v21 }
 0x284   :  { %v126_v24 = vrot.slane %v125_v23, 2 }
 0x286   :  { %v127_v25 = vadd.f32 %v126_v24, %v125_v23 }
 0x288   :  { %v128_v26 = vrot.slane %v127_v25, 1 }
 0x28a   :  { %v129_v27 = vadd.f32 %v128_v26, %v127_v25 }
 0x28c   :  { %165 = vpush %v129_v27 }
 0x2bd   :  { %s166_s19 = spop %165 }
 0x2be   :  { %v131_v28 = vstv %s166_s19 }
 0x2bf   :  { %133 = vst.msk [vmem:[#allocation2] sm:$0x1] %vm132_vm8, %v131_v28 }
 0x2c0   :  { %185 = shalt.err (!%p182_p4)
}
 0x2c1   :  { %s186_s24 = scalar_lea.hbm %s251_s3, 16 }
 0x2c2   :  { %p187_p5 = scmp.ne.s32.totalorder %s251_s3, %s186_s24  ;;  %p190_p6 = scmp.lt.u32.totalorder %s186_s24, %s251_s3 }
 0x2c4   :  { %p192_p7 = pnand %p190_p6, %p187_p5 }
 0x2c6   :  { %195 = shalt.err (!%p192_p7)
}
 0x2c7   :  { %143 = dma.vmem_to_hbm [thread:$0]  %s141_s18, 16, %s251_s3, [#allocation3]  }
 0x2c8   :  { %196 = dma.done.wait [#allocation3], 16  }
 0x2c9   :  { %197 = vsyncadd [#allocation3], 4294967280 }
 0x2ca   :  { %147 = vsyncpa [#allocation3], 1 }

// kernel: tpu_custom_call.1
= control target key start
LH: loop header
LB: loop body
LE: loop exit
PB: predicated region body
PF: predicated region fallthrough
CT: control target
= control target key end

     0   :  { %v198_v3 = vmov 0   ;;  %v199_v4 = vmov 0.0|0.0   ;;  %vm30_vm0 = vcmask 1041408   ;;  %s248_s0 = inlined_call_operand.vmem [shape: f32[8,2], index: 0, kind: input, shape index: {}]   ;;  %s249_s1 = inlined_call_operand.vmem [shape: s32[8,1], index: 1, kind: input, shape index: {}]   ;;  %s250_s2 = inlined_call_operand.vmem [shape: f32[10,2], index: 2, kind: input, shape index: {}]   ;;  %s251_s3 = inlined_call_operand.hbm [shape: f32[1,1,1], index: 3, kind: output, shape index: {}]  }
   0x1   :  { %v15_v0 = vld [vmem:[%s249_s1] sm:$0xff]  ;;  %v25_v2 = vld [vmem:[%s250_s2 + $0x8] sm:$0x3]  ;;  %173 = vset.pattern.permute.xlu0 %v198_v3  ;;  %161 = vmatprep.subr.bf16.mxu0 %v199_v4 }
   0x2   :  { %v24_v1 = vld [vmem:[%s250_s2] sm:$0xff] }
   0x3   :  { %v162_v5 = vpack.c.bf16 %v25_v2, %v24_v1 }
   0x4   :  { %8 = vsyncpa [#allocation3], 0  ;;  %19 = vperm.xlu0 %173, %v15_v0   ;;  %vm200_vm1 = vmmov 1   ;;  %vm201_vm3 = vmmov 0   ;;  %v202_v6 = vmov 0.0   ;;  %v16_v7 = vlaneseq  ;;  %v104_v11 = vld [vmem:[%s248_s0] sm:$0xff] }
   0x5   :  { %vm163_vm2 = vmpackc.low %vm30_vm0, %vm200_vm1  ;;  %158 = vmatprep.mubr.msk.f32.mxu0 %vm201_vm3, %v202_v6  ;;  %vm26_vm4 = vcmask 80896   ;;  %vm107_vm6 = vcmask 15360   ;;  %vm120_vm7 = vcmask 7168   ;;  %s203_s0 = smov [#allocation2]   ;;  %vm132_vm8 = vcmask 0  }
   0x6   :  { %164 = vmatpush3.bf16.msk.msra.mxu0 %vm163_vm2, %v162_v5  ;;  %v17_v8 = vand.u32 127, %v16_v7  ;;  %s140_s18 = sshll.u32 %s203_s0, 4  ;;  %s141_s18 = int_to_ptr.vmem [resolvable:$true] %s140_s18 }
   0x7   :  { %s174_s20 = scalar_lea.vmem %s141_s18, 16  ;;  %s178_s21 = scalar_lea.vmem %s141_s18, 32 }
   0x8   :  { %p175_p0 = scmp.ne.s32.totalorder %s141_s18, %s174_s20  ;;  %p179_p1 = scmp.lt.s32.totalorder %s141_s18, %s141_s18 }
   0x9   :  { %p180_p2 = scmp.lt.s32.totalorder %s178_s21, %s174_s20 }
   0xb   :  { %p181_p3 = por %p180_p2, %p179_p1 }
   0xd   :  { %p182_p4 = pnand %p181_p3, %p175_p0 }
  0x83   :  { %v20_v9 = vpop.permute.xlu0 %19 }
  0x84   :  { %vm21_vm5 = vcmp.eq.s32.totalorder %v20_v9, %v17_v8 }
  0x85   :  { %v148_v10 = vsel %vm21_vm5, 1.0, %v202_v6 }
  0x86   :  { %159 = vmatmul.mubr.msk.f32.vlgmr.msra.gmra.mrb[0].mxu0 %vm26_vm4, %v148_v10 }
 0x159   :  { %v100_v12 = vpop.f32.mrb[0].mxu0 }
 0x15a   :  { %v105_v13 = vsub.f32 %v104_v11, %v100_v12  ;;  %v160_v14 = vpop.f32.mrb[1].mxu0 }
 0x15c   :  { %v106_v15 = vmul.f32 %v105_v13, %v105_v13 }
 0x15e   :  { %v108_v16 = vsel %vm107_vm6, %v106_v15, 0.0 }
 0x15f   :  { %109 = vadd.xlane.f32.xlu0 %v108_v16 }
 0x1ec   :  { %v110_v17 = vpop.xlane.xlu0 %109 }
 0x1ed   :  { %v111_v18 = vmax.f32 %v110_v17, 1e-12 }
 0x1ef   :  { %v112_v19 = vmin.f32 %v111_v18, 1e+12 }
 0x1f1   :  { %v121_v20 = vsel %vm120_vm7, %v112_v19, 0.0 }
 0x1f2   :  { %122 = vadd.xlane.f32.xlu1 %v121_v20 }
 0x27f   :  { %v123_v21 = vpop.xlane.xlu1 %122 }
 0x280   :  { %v124_v22 = vrot.slane %v123_v21, 4 }
 0x282   :  { %v125_v23 = vadd.f32 %v124_v22, %v123_v21 }
 0x284   :  { %v126_v24 = vrot.slane %v125_v23, 2 }
 0x286   :  { %v127_v25 = vadd.f32 %v126_v24, %v125_v23 }
 0x288   :  { %v128_v26 = vrot.slane %v127_v25, 1 }
 0x28a   :  { %v129_v27 = vadd.f32 %v128_v26, %v127_v25 }
 0x28c   :  { %165 = vpush %v129_v27 }
 0x2bd   :  { %s166_s19 = spop %165 }
 0x2be   :  { %v131_v28 = vstv %s166_s19 }
 0x2bf   :  { %133 = vst.msk [vmem:[#allocation2] sm:$0x1] %vm132_vm8, %v131_v28 }
 0x2c0   :  { %185 = shalt.err (!%p182_p4)
}
 0x2c1   :  { %s186_s24 = scalar_lea.hbm %s251_s3, 16 }
 0x2c2   :  { %p187_p5 = scmp.ne.s32.totalorder %s251_s3, %s186_s24  ;;  %p190_p6 = scmp.lt.u32.totalorder %s186_s24, %s251_s3 }
 0x2c4   :  { %p192_p7 = pnand %p190_p6, %p187_p5 }
 0x2c6   :  { %195 = shalt.err (!%p192_p7)
}
 0x2c7   :  { %143 = dma.vmem_to_hbm [thread:$0]  %s141_s18, 16, %s251_s3, [#allocation3]  }
 0x2c8   :  { %196 = dma.done.wait [#allocation3], 16  }
 0x2c9   :  { %197 = vsyncadd [#allocation3], 4294967280 }
 0x2ca   :  { %147 = vsyncpa [#allocation3], 1 }

</bundles_post_ra>
